<compile_context>
chip_gen: v7x
topology: tpu7x:2x2x1
jax: 0.10.0
libtpu: 0.0.40
codegen_flags: <defaults>
</compile_context>

<pallas_src>
import functools

import jax
import jax.numpy as jnp
from jax import lax
from jax.experimental import pallas as pl
from jax.experimental.pallas import tpu as pltpu


def _round_up(x: int, m: int) -> int:
    return (x + m - 1) // m * m


_VMEM_TILE_BUDGET = 36 * 1024 * 1024   # tile-sizing budget; 1.25x request stays < 48 MiB
_W_BLOCK_BYTES_MAX = 8 * 1024 * 1024   # K-tile the weight above this (v7x-safe)


def _fc_kernel(x_ref, w_ref, b_ref, o_ref, *scratch, activation, compute_dtype, nk):
    """One batch tile (x 1 K tile) of: activation(x @ w.T + b).

    x_ref: (tb, tk)       input tile (any float dtype; cast to compute_dtype here)
    w_ref: (n_pad, tk)    weight tile, already stored in compute_dtype (cast hoisted)
    b_ref: (1, n_pad)     f32 bias
    o_ref: (tb, n_pad)    lane-dense output tile
    scratch: () for nk == 1, (acc_ref,) f32 accumulator for nk > 1
    """
    x = x_ref[...]
    if x.dtype != compute_dtype:
        x = x.astype(compute_dtype)
    w = w_ref[...]  # already compute_dtype; no per-step (N x K) cast

    # x (tb, k) contracted with w (n_pad, k) on the k axis == x @ w.T; the MXU
    # consumes the PyTorch (out_feat, in_feat) layout directly (no HBM transpose).
    part = lax.dot_general(
        x, w,
        dimension_numbers=(((1,), (1,)), ((), ())),
        preferred_element_type=jnp.float32,
    )

    def epilogue(acc_f32):
        acc_f32 = acc_f32 + b_ref[...]          # f32 bias broadcast (VPU)
        if activation == "relu":
            acc_f32 = jnp.maximum(acc_f32, 0.0)  # VPU
        else:                                    # sigmoid -> EUP transcendental
            acc_f32 = 1.0 / (1.0 + jnp.exp(-acc_f32))
        return acc_f32.astype(o_ref.dtype)

    if nk == 1:
        # Fast path: whole K in one step, no accumulator round-trip.
        o_ref[...] = epilogue(part)
    else:
        acc_ref, = scratch

        @pl.when(pl.program_id(1) == 0)
        def _():
            acc_ref[...] = jnp.zeros_like(acc_ref)

        acc_ref[...] += part

        @pl.when(pl.program_id(1) == nk - 1)
        def _():
            o_ref[...] = epilogue(acc_ref[...])


def _const_spec(shape, index_map, single_buffer):
    """BlockSpec helper: optionally single-buffer a grid-resident operand."""
    if single_buffer:
        return pl.BlockSpec(shape, index_map, pipeline_mode=pl.Buffered(1))
    return pl.BlockSpec(shape, index_map)


@functools.partial(
    jax.jit,
    static_argnames=("activation", "tb", "tk", "compute_dtype",
                     "single_buffer_params", "return_padded"))
def _fc_impl(x, weight, bias, *, activation, tb, tk, compute_dtype,
             single_buffer_params, return_padded):
    B, K = x.shape
    out_feat = weight.shape[0]
    out_dtype = x.dtype

    x_item = x.dtype.itemsize
    w_item = jax.dtypes.canonicalize_dtype(compute_dtype).itemsize
    o_item = jax.dtypes.canonicalize_dtype(out_dtype).itemsize

    # --- Lane-dense output: pad out_feat to a multiple of 128 (unmasked vst). ---
    n_pad = _round_up(out_feat, 128)
    if n_pad != out_feat:
        weight = jnp.pad(weight, ((0, n_pad - out_feat), (0, 0)))
        bias = jnp.pad(bias, (0, n_pad - out_feat))

    # --- Hoisted weight cast: store the weight in compute_dtype once (fuses with
    #     the pad under jit).  Callers holding bf16 weights skip this entirely. ---
    if weight.dtype != compute_dtype:
        weight = weight.astype(compute_dtype)
    b2 = bias.astype(jnp.float32).reshape(1, n_pad)

    # --- K (in_feat) tiling: only when the full weight block would blow VMEM. ---
    if tk is None:
        tk = K
        if n_pad * K * w_item > _W_BLOCK_BYTES_MAX and K % 128 == 0:
            tk = 128
            for cand in (2048, 1024, 512, 256):
                if K % cand == 0 and n_pad * cand * w_item <= _W_BLOCK_BYTES_MAX:
                    tk = cand
                    break
    if tk != K and (K % tk != 0 or tk % 128 != 0):
        raise ValueError("tk must divide in_feat and be a multiple of 128")
    nk = K // tk

    # --- Batch tile: >= 2 grid steps for big B (v7x has 2 TCs), capped at 2048
    #     to amortize per-step overhead, shrunk to the VMEM budget. ---
    m = 8 * (4 // x_item)          # 8 for f32, 16 for bf16 (sublane pack)
    if tb is None:
        tb = _round_up(pl.cdiv(B, 2), m)
        tb = min(tb, 2048)
        tb = max(min(tb, _round_up(B, m)), m)
    tb = _round_up(int(tb), m)

    w_bufs = 1 if (single_buffer_params and nk == 1) else 2
    b_bufs = 1 if single_buffer_params else 2
    fixed_bytes = w_bufs * n_pad * tk * w_item + b_bufs * n_pad * 4
    per_row_bytes = 2 * tk * x_item + 2 * n_pad * o_item + (4 * n_pad if nk > 1 else 0)
    tb_fit = max(m, ((_VMEM_TILE_BUDGET - fixed_bytes) // per_row_bytes) // m * m)
    tb = max(m, min(tb, tb_fit))
    grid_b = pl.cdiv(B, tb)

    # --- VMEM limit: ~1.25x actual need, floor 16 MiB, cap 48 MiB (v7x-safe). ---
    vmem_need = fixed_bytes + tb * per_row_bytes
    vmem_limit = int(min(max(int(vmem_need * 1.25), 16 * 1024 * 1024),
                         48 * 1024 * 1024))

    flops = 2 * B * K * n_pad
    transcendentals = 0 if activation == "relu" else B * n_pad
    bytes_accessed = (B * K * x_item + n_pad * K * w_item + n_pad * 4
                      + B * n_pad * o_item)

    kernel = functools.partial(_fc_kernel, activation=activation,
                               compute_dtype=compute_dtype, nk=nk)

    if nk == 1:
        grid = (grid_b,)
        in_specs = [
            pl.BlockSpec((tb, K), lambda i: (i, 0)),
            # Constant index maps -> DMA'd once across the whole grid.
            _const_spec((n_pad, K), lambda i: (0, 0), single_buffer_params),
            _const_spec((1, n_pad), lambda i: (0, 0), single_buffer_params),
        ]
        out_specs = pl.BlockSpec((tb, n_pad), lambda i: (i, 0))
        scratch_shapes = []
        dims = ("parallel",)
    else:
        grid = (grid_b, nk)   # reduction axis last ("arbitrary")
        in_specs = [
            pl.BlockSpec((tb, tk), lambda i, k: (i, k)),
            pl.BlockSpec((n_pad, tk), lambda i, k: (0, k)),
            _const_spec((1, n_pad), lambda i, k: (0, 0), single_buffer_params),
        ]
        out_specs = pl.BlockSpec((tb, n_pad), lambda i, k: (i, 0))
        scratch_shapes = [pltpu.VMEM((tb, n_pad), jnp.float32)]
        dims = ("parallel", "arbitrary")

    out = pl.pallas_call(
        kernel,
        out_shape=jax.ShapeDtypeStruct((B, n_pad), out_dtype),
        grid_spec=pltpu.PrefetchScalarGridSpec(
            num_scalar_prefetch=0,
            grid=grid,
            in_specs=in_specs,
            out_specs=out_specs,
            scratch_shapes=scratch_shapes,
        ),
        compiler_params=pltpu.CompilerParams(
            dimension_semantics=dims,
            vmem_limit_bytes=vmem_limit,
        ),
        cost_estimate=pl.CostEstimate(
            flops=flops,
            transcendentals=transcendentals,
            bytes_accessed=bytes_accessed,
        ),
    )(x, weight, b2)

    if return_padded or n_pad == out_feat:
        return out
    # Callers chaining layers should pass return_padded=True and zero the next
    # layer's matching weight columns instead of paying this XLA slice copy
    # (careful: with sigmoid the padded columns hold 0.5, not 0).
    return out[:, :out_feat]


def fully_connected_layer(x, weight, bias, *, activation="relu", tb=None, tk=None,
                          compute_dtype=jnp.bfloat16, return_padded=False,
                          single_buffer_params=True):
    """Pallas equivalent of FullyConnectedLayer.forward.

    x:      (B, in_feat)            float32 or bfloat16 (output matches x.dtype)
    weight: (out_feat, in_feat)     PyTorch nn.Linear layout, no transpose needed
    bias:   (out_feat,)
    Pass compute_dtype=jnp.float32 for exact f32-matmul parity with PyTorch.
    """
    kwargs = dict(activation=activation, tb=tb, tk=tk, compute_dtype=compute_dtype,
                  return_padded=return_padded)
    if single_buffer_params:
        try:
            return _fc_impl(x, weight, bias, single_buffer_params=True, **kwargs)
        except Exception:
            # pl.Buffered(1) not accepted by this jax/libtpu build -> fall back to
            # the default double-buffered specs (correctness identical).
            pass
    return _fc_impl(x, weight, bias, single_buffer_params=False, **kwargs)


if __name__ == "__main__":
    # Deterministic setup: small shapes consistent with a NeRF MLP layer.
    B, in_feat, out_feat = 8, 32, 64

    key = jax.random.PRNGKey(0)
    kx, kw, kb = jax.random.split(key, 3)

    x = jax.random.normal(kx, (B, in_feat), dtype=jnp.float32)
    # nn.Linear default init: uniform(-1/sqrt(in_feat), 1/sqrt(in_feat))
    bound = 1.0 / (in_feat ** 0.5)
    weight = jax.random.uniform(kw, (out_feat, in_feat), jnp.float32, -bound, bound)
    bias = jax.random.uniform(kb, (out_feat,), jnp.float32, -bound, bound)

    ref = jnp.maximum(x @ weight.T + bias, 0.0)

    # 1) Default (bf16 MXU) relu path.
    out = jax.block_until_ready(
        fully_connected_layer(x, weight, bias, activation="relu"))
    assert out.shape == (B, out_feat)
    assert jnp.allclose(out, ref, atol=3e-2, rtol=3e-2), "bf16 relu mismatch"

    # 2) f32 path: tight check of padding + transposed contraction plumbing.
    out_f32 = jax.block_until_ready(
        fully_connected_layer(x, weight, bias, activation="relu",
                              compute_dtype=jnp.float32))
    assert jnp.allclose(out_f32, ref, atol=1e-4, rtol=1e-4), "f32 relu mismatch"

    # 3) Sigmoid variant of the module.
    out_sig = jax.block_until_ready(
        fully_connected_layer(x, weight, bias, activation="sigmoid",
                              compute_dtype=jnp.float32))
    ref_sig = jax.nn.sigmoid(x @ weight.T + bias)
    assert jnp.allclose(out_sig, ref_sig, atol=1e-4, rtol=1e-4), "sigmoid mismatch"

    # 4) bf16 I/O path (halved HBM bytes in the memory-bound regime).
    out_bf = jax.block_until_ready(
        fully_connected_layer(x.astype(jnp.bfloat16), weight.astype(jnp.bfloat16),
                              bias, activation="relu"))
    assert out_bf.dtype == jnp.bfloat16
    assert jnp.allclose(out_bf.astype(jnp.float32), ref, atol=3e-2, rtol=3e-2), \
        "bf16 I/O mismatch"

    # 5) Forced K-tiled (accumulator) path on a slightly larger aligned layer.
    B2, K2, N2 = 64, 256, 128
    k1, k2, k3 = jax.random.split(jax.random.PRNGKey(0), 3)
    x2 = jax.random.normal(k1, (B2, K2), dtype=jnp.float32)
    w2 = jax.random.uniform(k2, (N2, K2), jnp.float32, -0.06, 0.06)
    b2 = jax.random.uniform(k3, (N2,), jnp.float32, -0.06, 0.06)
    out_kt = jax.block_until_ready(
        fully_connected_layer(x2, w2, b2, activation="relu", tk=128,
                              compute_dtype=jnp.float32))
    ref_kt = jnp.maximum(x2 @ w2.T + b2, 0.0)
    assert jnp.allclose(out_kt, ref_kt, atol=1e-4, rtol=1e-4), "K-tiled mismatch"

    print("KERNEL_OK")
</pallas_src>

<mosaic_0001>
module attributes {stable_mosaic.version = 11 : i64} {
  func.func @_fc_kernel(%arg0: i32, %arg1: memref<8x32xf32, #tpu.memory_space<vmem>>, %arg2: memref<128x32xbf16, #tpu.memory_space<vmem>>, %arg3: memref<1x128xf32, #tpu.memory_space<vmem>>, %arg4: memref<8x128xf32, #tpu.memory_space<vmem>>) attributes {dimension_semantics = [#tpu.dimension_semantics<parallel>], iteration_bounds = array<i64: 1>, scalar_prefetch = 0 : i64, scratch_operands = 0 : i64, tpu.core_type = #tpu.core_type<tc>, window_params = [{transform_indices = @transform_0, window_bounds = array<i64: 8, 32>}, {pipeline_mode = #tpu.pipeline_mode<synchronous>, transform_indices = @transform_1, window_bounds = array<i64: 128, 32>}, {pipeline_mode = #tpu.pipeline_mode<synchronous>, transform_indices = @transform_2, window_bounds = array<i64: 1, 128>}, {transform_indices = @transform_3, window_bounds = array<i64: 8, 128>}]} {
    %c0 = arith.constant 0 : index
    %c0_0 = arith.constant 0 : index
    %0 = vector.load %arg1[%c0, %c0_0] : memref<8x32xf32, #tpu.memory_space<vmem>>, vector<8x32xf32>
    %1 = arith.truncf %0 : vector<8x32xf32> to vector<8x32xbf16>
    %c0_1 = arith.constant 0 : index
    %c0_2 = arith.constant 0 : index
    %2 = vector.load %arg2[%c0_1, %c0_2] : memref<128x32xbf16, #tpu.memory_space<vmem>>, vector<128x32xbf16>
    %cst = arith.constant dense<0.000000e+00> : vector<8x128xf32>
    %3 = tpu.matmul %1, %2, %cst {dimension_numbers = #tpu.dot_dimension_numbers<[1], [1], [0], [0], [0, 0, 1, 0], [], []>} : vector<8x32xbf16>, vector<128x32xbf16>, vector<8x128xf32> -> vector<8x128xf32>
    %c0_3 = arith.constant 0 : index
    %c0_4 = arith.constant 0 : index
    %4 = vector.load %arg3[%c0_3, %c0_4] : memref<1x128xf32, #tpu.memory_space<vmem>>, vector<1x128xf32>
    %5 = vector.broadcast %4 : vector<1x128xf32> to vector<8x128xf32>
    %6 = arith.addf %3, %5 : vector<8x128xf32>
    %cst_5 = arith.constant 0.000000e+00 : f32
    %7 = vector.broadcast %cst_5 : f32 to vector<8x128xf32>
    %8 = arith.maximumf %6, %7 : vector<8x128xf32>
    %c0_6 = arith.constant 0 : index
    %c0_7 = arith.constant 0 : index
    %9 = vector.load %arg4[%c0_6, %c0_7] : memref<8x128xf32, #tpu.memory_space<vmem>>, vector<8x128xf32>
    tpu.vector_store %arg4[%c0_6, %c0_7], %8 {strides = array<i32>} : memref<8x128xf32, #tpu.memory_space<vmem>>, vector<8x128xf32>,
    return
  }
  func.func @transform_0(%arg0: i32) -> (i32, i32) {
    %c0_i32 = arith.constant 0 : i32
    %c0_i32_0 = arith.constant 0 : i32
    return %arg0, %c0_i32 : i32, i32
  }
  func.func @transform_1(%arg0: i32) -> (i32, i32) {
    %c0_i32 = arith.constant 0 : i32
    %c0_i32_0 = arith.constant 0 : i32
    %c0_i32_1 = arith.constant 0 : i32
    return %c0_i32, %c0_i32_0 : i32, i32
  }
  func.func @transform_2(%arg0: i32) -> (i32, i32) {
    %c0_i32 = arith.constant 0 : i32
    %c0_i32_0 = arith.constant 0 : i32
    %c0_i32_1 = arith.constant 0 : i32
    return %c0_i32, %c0_i32_0 : i32, i32
  }
  func.func @transform_3(%arg0: i32) -> (i32, i32) {
    %c0_i32 = arith.constant 0 : i32
    %c0_i32_0 = arith.constant 0 : i32
    return %arg0, %c0_i32 : i32, i32
  }
}

module attributes {stable_mosaic.version = 11 : i64} {
  func.func @_fc_kernel(%arg0: i32, %arg1: memref<8x32xf32, #tpu.memory_space<vmem>>, %arg2: memref<128x32xbf16, #tpu.memory_space<vmem>>, %arg3: memref<1x128xf32, #tpu.memory_space<vmem>>, %arg4: memref<8x128xf32, #tpu.memory_space<vmem>>) attributes {dimension_semantics = [#tpu.dimension_semantics<parallel>], iteration_bounds = array<i64: 1>, scalar_prefetch = 0 : i64, scratch_operands = 0 : i64, tpu.core_type = #tpu.core_type<tc>, window_params = [{transform_indices = @transform_0, window_bounds = array<i64: 8, 32>}, {pipeline_mode = #tpu.pipeline_mode<synchronous>, transform_indices = @transform_1, window_bounds = array<i64: 128, 32>}, {pipeline_mode = #tpu.pipeline_mode<synchronous>, transform_indices = @transform_2, window_bounds = array<i64: 1, 128>}, {transform_indices = @transform_3, window_bounds = array<i64: 8, 128>}]} {
    %c0 = arith.constant 0 : index
    %c0_0 = arith.constant 0 : index
    %0 = vector.load %arg1[%c0, %c0_0] : memref<8x32xf32, #tpu.memory_space<vmem>>, vector<8x32xf32>
    %1 = arith.truncf %0 : vector<8x32xf32> to vector<8x32xbf16>
    %c0_1 = arith.constant 0 : index
    %c0_2 = arith.constant 0 : index
    %2 = vector.load %arg2[%c0_1, %c0_2] : memref<128x32xbf16, #tpu.memory_space<vmem>>, vector<128x32xbf16>
    %cst = arith.constant dense<0.000000e+00> : vector<8x128xf32>
    %3 = tpu.matmul %1, %2, %cst {dimension_numbers = #tpu.dot_dimension_numbers<[1], [1], [0], [0], [0, 0, 1, 0], [], []>} : vector<8x32xbf16>, vector<128x32xbf16>, vector<8x128xf32> -> vector<8x128xf32>
    %c0_3 = arith.constant 0 : index
    %c0_4 = arith.constant 0 : index
    %4 = vector.load %arg3[%c0_3, %c0_4] : memref<1x128xf32, #tpu.memory_space<vmem>>, vector<1x128xf32>
    %5 = vector.broadcast %4 : vector<1x128xf32> to vector<8x128xf32>
    %6 = arith.addf %3, %5 : vector<8x128xf32>
    %cst_5 = arith.constant 0.000000e+00 : f32
    %7 = vector.broadcast %cst_5 : f32 to vector<8x128xf32>
    %8 = arith.maximumf %6, %7 : vector<8x128xf32>
    %c0_6 = arith.constant 0 : index
    %c0_7 = arith.constant 0 : index
    %9 = vector.load %arg4[%c0_6, %c0_7] : memref<8x128xf32, #tpu.memory_space<vmem>>, vector<8x128xf32>
    tpu.vector_store %arg4[%c0_6, %c0_7], %8 {strides = array<i32>} : memref<8x128xf32, #tpu.memory_space<vmem>>, vector<8x128xf32>,
    return
  }
  func.func @transform_0(%arg0: i32) -> (i32, i32) {
    %c0_i32 = arith.constant 0 : i32
    %c0_i32_0 = arith.constant 0 : i32
    return %arg0, %c0_i32 : i32, i32
  }
  func.func @transform_1(%arg0: i32) -> (i32, i32) {
    %c0_i32 = arith.constant 0 : i32
    %c0_i32_0 = arith.constant 0 : i32
    %c0_i32_1 = arith.constant 0 : i32
    return %c0_i32, %c0_i32_0 : i32, i32
  }
  func.func @transform_2(%arg0: i32) -> (i32, i32) {
    %c0_i32 = arith.constant 0 : i32
    %c0_i32_0 = arith.constant 0 : i32
    %c0_i32_1 = arith.constant 0 : i32
    return %c0_i32, %c0_i32_0 : i32, i32
  }
  func.func @transform_3(%arg0: i32) -> (i32, i32) {
    %c0_i32 = arith.constant 0 : i32
    %c0_i32_0 = arith.constant 0 : i32
    return %arg0, %c0_i32 : i32, i32
  }
}

</mosaic_0001>

<bundles_post_ra>
// kernel: _fc_impl.1
= control target key start
LH: loop header
LB: loop body
LE: loop exit
PB: predicated region body
PF: predicated region fallthrough
CT: control target
= control target key end

     0   :  { %v239_v1 = vmov 0.0   ;;  %vm81_vm0 = vcmask 261120   ;;  %vm240_vm1 = vmmov 0   ;;  %s313_s0 = inlined_call_operand.vmem [shape: f32[8,32], index: 0, kind: input, shape index: {}]   ;;  %s314_s1 = inlined_call_operand.vmem [shape: bf16[128,32], index: 1, kind: input, shape index: {}]   ;;  %s315_s2 = inlined_call_operand.vmem [shape: f32[1,128], index: 2, kind: input, shape index: {}]   ;;  %s316_s3 = inlined_call_operand.hbm [shape: f32[8,128], index: 3, kind: output, shape index: {}]  }
   0x1   :  { %v207_v0 = vld [vmem:[%s314_s1] sm:$0xff]   ;;  %184 = vmatprep.subr.bf16.mxu0 %v239_v1  ;;  %v208_v3 = vld [vmem:[%s314_s1 + $0x8] sm:$0xff]   ;;  %200 = vmatprep.mubr.msk.bf16.mxu0 %vm240_vm1, %v239_v1 }
   0x2   :  { %v86_v2 = vsel %vm81_vm0, %v207_v0, 0  ;;  %v89_v4 = vsel %vm81_vm0, %v208_v3, 0 }
   0x3   :  { %185 = vmatpush3.bf16.xpose.msra.mxu0 %v86_v2 }
   0x4   :  { %186 = vmatprep.subr.bf16.mxu0 %v239_v1 }
   0x5   :  { %8 = vsyncpa [#allocation3], 0  ;;  %v209_v5 = vld [vmem:[%s314_s1 + $0x10] sm:$0xff]   ;;  %v210_v7 = vld [vmem:[%s314_s1 + $0x18] sm:$0xff]   ;;  %s241_s5 = smov [#allocation2]  }
   0x6   :  { %v92_v6 = vsel %vm81_vm0, %v209_v5, 0  ;;  %v95_v8 = vsel %vm81_vm0, %v210_v7, 0  ;;  %v211_v9 = vld [vmem:[%s314_s1 + $0x20] sm:$0xff]   ;;  %v212_v11 = vld [vmem:[%s314_s1 + $0x28] sm:$0xff]   ;;  %v213_v13 = vld [vmem:[%s314_s1 + $0x30] sm:$0xff]   ;;  %s157_s6 = sshll.u32 %s241_s5, 4  ;;  %s158_s6 = int_to_ptr.vmem [resolvable:$true] %s157_s6 }
   0x7   :  { %v98_v10 = vsel %vm81_vm0, %v211_v9, 0  ;;  %v101_v12 = vsel %vm81_vm0, %v212_v11, 0  ;;  %v104_v14 = vsel %vm81_vm0, %v213_v13, 0  ;;  %v214_v15 = vld [vmem:[%s314_s1 + $0x38] sm:$0xff]   ;;  %v16_v17 = vld [vmem:[%s313_s0] sm:$0xff]  ;;  %s215_s1 = scalar_lea.vmem %s158_s6, 128  ;;  %p220_p1 = scmp.lt.s32.totalorder %s158_s6, %s158_s6 }
   0x8   :  { %v107_v16 = vsel %vm81_vm0, %v214_v15, 0  ;;  %v17_v18 = vpack.c.bf16 %v16_v17, %v16_v17  ;;  %v165_v19 = vld [vmem:[%s315_s2] ss:$0 sm:$0xff]  ;;  %p216_p0 = scmp.ne.s32.totalorder %s158_s6, %s215_s1  ;;  %p221_p2 = scmp.lt.s32.totalorder %s215_s1, %s215_s1 }
   0xa   :  { %p222_p3 = por %p221_p2, %p220_p1 }
   0xb   :  { %187 = vmatpush3.bf16.xpose.msra.mxu0 %v89_v4 }
   0xc   :  { %188 = vmatprep.subr.bf16.mxu0 %v239_v1  ;;  %p223_p4 = pnand %p222_p3, %p216_p0 }
  0x13   :  { %189 = vmatpush3.bf16.xpose.msra.mxu0 %v92_v6 }
  0x14   :  { %190 = vmatprep.subr.bf16.mxu0 %v239_v1 }
  0x1b   :  { %191 = vmatpush3.bf16.xpose.msra.mxu0 %v95_v8 }
  0x1c   :  { %192 = vmatprep.subr.bf16.mxu0 %v239_v1 }
  0x23   :  { %193 = vmatpush3.bf16.xpose.msra.mxu0 %v98_v10 }
  0x24   :  { %194 = vmatprep.subr.bf16.mxu0 %v239_v1 }
  0x2b   :  { %195 = vmatpush3.bf16.xpose.msra.mxu0 %v101_v12 }
  0x2c   :  { %196 = vmatprep.subr.bf16.mxu0 %v239_v1 }
  0x33   :  { %197 = vmatpush3.bf16.xpose.msra.mxu0 %v104_v14 }
  0x34   :  { %198 = vmatprep.subr.bf16.mxu0 %v239_v1 }
  0x3b   :  { %199 = vmatpush3.bf16.xpose.msra.mxu0 %v107_v16 }
  0x42   :  { %201 = vmatmul.mubr.msk.bf16.vlgmr.msra.gmra.mrb[0].mxu0 %vm81_vm0, %v17_v18 }
 0x115   :  { %v143_v20 = vpop.f32.mrb[0].mxu0 }
 0x116   :  { %v144_v21 = vadd.f32 %v165_v19, %v143_v20  ;;  %v202_v22 = vpop.f32.mrb[1].mxu0 }
 0x117   :  { %v146_v23 = vpop.f32.mrb[2].mxu0 }
 0x118   :  { %v149_v24 = vmax.f32 %v144_v21, 0.0  ;;  %v203_v25 = vpop.f32.mrb[3].mxu0 }
 0x11a   :  { %150 = vst [vmem:[#allocation2] sm:$0xff] %v149_v24 }
 0x11b   :  { %226 = shalt.err (!%p223_p4)
}
 0x11c   :  { %s227_s2 = scalar_lea.hbm %s316_s3, 128 }
 0x11d   :  { %p228_p5 = scmp.ne.s32.totalorder %s316_s3, %s227_s2  ;;  %p231_p6 = scmp.lt.u32.totalorder %s227_s2, %s316_s3 }
 0x11f   :  { %p233_p7 = pnand %p231_p6, %p228_p5 }
 0x121   :  { %236 = shalt.err (!%p233_p7)
}
 0x122   :  { %160 = dma.vmem_to_hbm [thread:$0]  %s158_s6, 128, %s316_s3, [#allocation3]  }
 0x123   :  { %237 = dma.done.wait [#allocation3], 128  }
 0x124   :  { %238 = vsyncadd [#allocation3], 4294967168 }
 0x125   :  { %164 = vsyncpa [#allocation3], 1 }

// kernel: _fc_impl.1
= control target key start
LH: loop header
LB: loop body
LE: loop exit
PB: predicated region body
PF: predicated region fallthrough
CT: control target
= control target key end

     0   :  { %v239_v1 = vmov 0.0   ;;  %vm81_vm0 = vcmask 261120   ;;  %vm240_vm1 = vmmov 0   ;;  %s313_s0 = inlined_call_operand.vmem [shape: f32[8,32], index: 0, kind: input, shape index: {}]   ;;  %s314_s1 = inlined_call_operand.vmem [shape: bf16[128,32], index: 1, kind: input, shape index: {}]   ;;  %s315_s2 = inlined_call_operand.vmem [shape: f32[1,128], index: 2, kind: input, shape index: {}]   ;;  %s316_s3 = inlined_call_operand.hbm [shape: f32[8,128], index: 3, kind: output, shape index: {}]  }
   0x1   :  { %v207_v0 = vld [vmem:[%s314_s1] sm:$0xff]   ;;  %184 = vmatprep.subr.bf16.mxu0 %v239_v1  ;;  %v208_v3 = vld [vmem:[%s314_s1 + $0x8] sm:$0xff]   ;;  %200 = vmatprep.mubr.msk.bf16.mxu0 %vm240_vm1, %v239_v1 }
   0x2   :  { %v86_v2 = vsel %vm81_vm0, %v207_v0, 0  ;;  %v89_v4 = vsel %vm81_vm0, %v208_v3, 0 }
   0x3   :  { %185 = vmatpush3.bf16.xpose.msra.mxu0 %v86_v2 }
   0x4   :  { %186 = vmatprep.subr.bf16.mxu0 %v239_v1 }
   0x5   :  { %8 = vsyncpa [#allocation3], 0  ;;  %v209_v5 = vld [vmem:[%s314_s1 + $0x10] sm:$0xff]   ;;  %v210_v7 = vld [vmem:[%s314_s1 + $0x18] sm:$0xff]   ;;  %s241_s5 = smov [#allocation2]  }
   0x6   :  { %v92_v6 = vsel %vm81_vm0, %v209_v5, 0  ;;  %v95_v8 = vsel %vm81_vm0, %v210_v7, 0  ;;  %v211_v9 = vld [vmem:[%s314_s1 + $0x20] sm:$0xff]   ;;  %v212_v11 = vld [vmem:[%s314_s1 + $0x28] sm:$0xff]   ;;  %v213_v13 = vld [vmem:[%s314_s1 + $0x30] sm:$0xff]   ;;  %s157_s6 = sshll.u32 %s241_s5, 4  ;;  %s158_s6 = int_to_ptr.vmem [resolvable:$true] %s157_s6 }
   0x7   :  { %v98_v10 = vsel %vm81_vm0, %v211_v9, 0  ;;  %v101_v12 = vsel %vm81_vm0, %v212_v11, 0  ;;  %v104_v14 = vsel %vm81_vm0, %v213_v13, 0  ;;  %v214_v15 = vld [vmem:[%s314_s1 + $0x38] sm:$0xff]   ;;  %v16_v17 = vld [vmem:[%s313_s0] sm:$0xff]  ;;  %s215_s1 = scalar_lea.vmem %s158_s6, 128  ;;  %p220_p1 = scmp.lt.s32.totalorder %s158_s6, %s158_s6 }
   0x8   :  { %v107_v16 = vsel %vm81_vm0, %v214_v15, 0  ;;  %v17_v18 = vpack.c.bf16 %v16_v17, %v16_v17  ;;  %v165_v19 = vld [vmem:[%s315_s2] ss:$0 sm:$0xff]  ;;  %p216_p0 = scmp.ne.s32.totalorder %s158_s6, %s215_s1  ;;  %p221_p2 = scmp.lt.s32.totalorder %s215_s1, %s215_s1 }
   0xa   :  { %p222_p3 = por %p221_p2, %p220_p1 }
   0xb   :  { %187 = vmatpush3.bf16.xpose.msra.mxu0 %v89_v4 }
   0xc   :  { %188 = vmatprep.subr.bf16.mxu0 %v239_v1  ;;  %p223_p4 = pnand %p222_p3, %p216_p0 }
  0x13   :  { %189 = vmatpush3.bf16.xpose.msra.mxu0 %v92_v6 }
  0x14   :  { %190 = vmatprep.subr.bf16.mxu0 %v239_v1 }
  0x1b   :  { %191 = vmatpush3.bf16.xpose.msra.mxu0 %v95_v8 }
  0x1c   :  { %192 = vmatprep.subr.bf16.mxu0 %v239_v1 }
  0x23   :  { %193 = vmatpush3.bf16.xpose.msra.mxu0 %v98_v10 }
  0x24   :  { %194 = vmatprep.subr.bf16.mxu0 %v239_v1 }
  0x2b   :  { %195 = vmatpush3.bf16.xpose.msra.mxu0 %v101_v12 }
  0x2c   :  { %196 = vmatprep.subr.bf16.mxu0 %v239_v1 }
  0x33   :  { %197 = vmatpush3.bf16.xpose.msra.mxu0 %v104_v14 }
  0x34   :  { %198 = vmatprep.subr.bf16.mxu0 %v239_v1 }
  0x3b   :  { %199 = vmatpush3.bf16.xpose.msra.mxu0 %v107_v16 }
  0x42   :  { %201 = vmatmul.mubr.msk.bf16.vlgmr.msra.gmra.mrb[0].mxu0 %vm81_vm0, %v17_v18 }
 0x115   :  { %v143_v20 = vpop.f32.mrb[0].mxu0 }
 0x116   :  { %v144_v21 = vadd.f32 %v165_v19, %v143_v20  ;;  %v202_v22 = vpop.f32.mrb[1].mxu0 }
 0x117   :  { %v146_v23 = vpop.f32.mrb[2].mxu0 }
 0x118   :  { %v149_v24 = vmax.f32 %v144_v21, 0.0  ;;  %v203_v25 = vpop.f32.mrb[3].mxu0 }
 0x11a   :  { %150 = vst [vmem:[#allocation2] sm:$0xff] %v149_v24 }
 0x11b   :  { %226 = shalt.err (!%p223_p4)
}
 0x11c   :  { %s227_s2 = scalar_lea.hbm %s316_s3, 128 }
 0x11d   :  { %p228_p5 = scmp.ne.s32.totalorder %s316_s3, %s227_s2  ;;  %p231_p6 = scmp.lt.u32.totalorder %s227_s2, %s316_s3 }
 0x11f   :  { %p233_p7 = pnand %p231_p6, %p228_p5 }
 0x121   :  { %236 = shalt.err (!%p233_p7)
}
 0x122   :  { %160 = dma.vmem_to_hbm [thread:$0]  %s158_s6, 128, %s316_s3, [#allocation3]  }
 0x123   :  { %237 = dma.done.wait [#allocation3], 128  }
 0x124   :  { %238 = vsyncadd [#allocation3], 4294967168 }
 0x125   :  { %164 = vsyncpa [#allocation3], 1 }

</bundles_post_ra>
